<compile_context>
chip_gen: v7x
topology: tpu7x:2x2x1
jax: 0.10.0
libtpu: 0.0.40
codegen_flags: <defaults>
</compile_context>

<pallas_src>
import functools
import math

import jax
import jax.numpy as jnp
from jax.experimental import pallas as pl
from jax.experimental.pallas import tpu as pltpu


_MAX_TB = 256                 # batch rows per block (sublane axis)
_MAX_TD = 4096                # flattened parameter columns per block (lane axis)
_VMEM_LIMIT = 32 * 1024 * 1024  # safe on v5e/v6e (128 MiB phys) and v7x (64 MiB phys)
_FUSED_MAX_BYTES = 8 * 1024 * 1024  # max raw input bytes for the single-launch fused path


# --------------------------------------------------------------------------
# Tiled kernel: grid = (ceil(B/tb), ceil(D/td)), per-i partial sums.
# --------------------------------------------------------------------------
def _tiled_kernel(pred_ref, gt_ref, w_ref, out_ref, *, B, D, tb, td, need_mask):
    """pred_ref/gt_ref: VMEM [tb, td]; w_ref: VMEM [tb, 1]; out_ref: SMEM [1, 1]."""
    j = pl.program_id(1)

    @pl.when(j == 0)
    def _():
        out_ref[0, 0] = jnp.float32(0.0)

    diff = pred_ref[...].astype(jnp.float32) - gt_ref[...].astype(jnp.float32)
    w = w_ref[...].astype(jnp.float32)              # [tb, 1] broadcasts over lanes
    contrib = w * (diff * diff)

    if need_mask:
        # Ragged boundary blocks: zero out-of-bounds positions *after* the
        # multiply so garbage (even Inf/NaN) in the OOB region cannot leak in.
        i = pl.program_id(0)
        row = jax.lax.broadcasted_iota(jnp.int32, (tb, td), 0) + i * tb
        col = jax.lax.broadcasted_iota(jnp.int32, (tb, td), 1) + j * td
        valid = jnp.logical_and(row < B, col < D)
        contrib = jnp.where(valid, contrib, jnp.float32(0.0))

    out_ref[0, 0] += jnp.sum(contrib)


def parameter_loss(pred_param, gt_param, has_param):
    """JAX wrapper matching ParameterLoss.forward for a single parameter group."""
    assert pred_param.shape == gt_param.shape
    B = pred_param.shape[0]
    D = int(math.prod(pred_param.shape[1:])) if pred_param.ndim > 1 else 1

    # Dense 2-D layout: [B, D] (contiguous reshape, no HBM transpose/pad).
    pred2 = pred_param.reshape(B, D)
    gt2 = gt_param.reshape(B, D)
    w2 = has_param.reshape(B, 1).astype(jnp.float32)

    # Full-extent blocks when small; aligned tiles when large (no padding).
    tb = B if B <= _MAX_TB else _MAX_TB
    td = D if D <= _MAX_TD else _MAX_TD
    ni = pl.cdiv(B, tb)
    nj = pl.cdiv(D, td)
    need_mask = (B % tb != 0) or (D % td != 0)

    kernel = functools.partial(_tiled_kernel, B=B, D=D, tb=tb, td=td,
                               need_mask=need_mask)

    partials = pl.pallas_call(
        kernel,
        out_shape=jax.ShapeDtypeStruct((ni, 1), jnp.float32),
        grid=(ni, nj),
        in_specs=[
            pl.BlockSpec((tb, td), lambda i, j: (i, j)),   # pred block
            pl.BlockSpec((tb, td), lambda i, j: (i, j)),   # gt block
            pl.BlockSpec((tb, 1), lambda i, j: (i, 0)),    # per-row weight
        ],
        out_specs=pl.BlockSpec((1, 1), lambda i, j: (i, 0),
                               memory_space=pltpu.MemorySpace.SMEM),
        compiler_params=pltpu.CompilerParams(
            # Batch axis shardable across TensorCores (v7x megacore);
            # feature axis carries the per-i accumulator -> "arbitrary".
            dimension_semantics=("parallel", "arbitrary"),
            vmem_limit_bytes=_VMEM_LIMIT),
    )(pred2, gt2, w2)
    return jnp.sum(partials).astype(pred_param.dtype)


# --------------------------------------------------------------------------
# Fused multi-group kernel: one pallas_call for body_pose / global_orient /
# betas style groups (launch + DMA-issue overhead dominates at real sizes).
# --------------------------------------------------------------------------
def _fused_kernel(*refs, n_groups):
    ins = refs[: 3 * n_groups]
    outs = refs[3 * n_groups:]
    for k in range(n_groups):
        pred_ref, gt_ref, w_ref = ins[3 * k], ins[3 * k + 1], ins[3 * k + 2]
        diff = pred_ref[...].astype(jnp.float32) - gt_ref[...].astype(jnp.float32)
        w = w_ref[...].astype(jnp.float32)
        outs[k][0, 0] = jnp.sum(w * (diff * diff))


def parameter_loss_grouped(groups):
    """groups: sequence of (pred_param, gt_param, has_param).

    Returns a list of scalar losses (same order), computed in a single
    pallas_call when all groups fit comfortably in VMEM; otherwise falls back
    to the tiled kernel per group.
    """
    total_bytes = sum(int(p.size) * p.dtype.itemsize + int(g.size) * g.dtype.itemsize
                      for p, g, _ in groups)
    if total_bytes > _FUSED_MAX_BYTES:
        return [parameter_loss(p, g, h) for p, g, h in groups]

    flat_inputs = []
    out_dtypes = []
    for p, g, h in groups:
        assert p.shape == g.shape
        B = p.shape[0]
        Dk = int(math.prod(p.shape[1:])) if p.ndim > 1 else 1
        flat_inputs += [p.reshape(B, Dk), g.reshape(B, Dk),
                        h.reshape(B, 1).astype(jnp.float32)]
        out_dtypes.append(p.dtype)

    K = len(groups)
    kernel = functools.partial(_fused_kernel, n_groups=K)
    outs = pl.pallas_call(
        kernel,
        out_shape=tuple(jax.ShapeDtypeStruct((1, 1), jnp.float32) for _ in range(K)),
        in_specs=[pl.BlockSpec(memory_space=pltpu.MemorySpace.VMEM)] * (3 * K),
        out_specs=tuple(pl.BlockSpec(memory_space=pltpu.MemorySpace.SMEM)
                        for _ in range(K)),
        compiler_params=pltpu.CompilerParams(vmem_limit_bytes=_VMEM_LIMIT),
    )(*flat_inputs)
    return [o[0, 0].astype(dt) for o, dt in zip(outs, out_dtypes)]


# --------------------------------------------------------------------------
# Pure-JAX reference mirroring the PyTorch forward.
# --------------------------------------------------------------------------
def _reference(pred, gt, has_param):
    B = pred.shape[0]
    mask_shape = (B,) + (1,) * (pred.ndim - 1)
    w = has_param.astype(pred.dtype).reshape(mask_shape)
    return jnp.sum(w * (pred - gt) ** 2)


if __name__ == "__main__":
    key = jax.random.PRNGKey(0)
    keys = jax.random.split(key, 12)
    B = 2

    # TokenHMR-style parameter groups.
    pred_bp = jax.random.normal(keys[0], (B, 24, 3, 3), dtype=jnp.float32)  # body pose
    gt_bp = jax.random.normal(keys[1], (B, 24, 3, 3), dtype=jnp.float32)
    has_bp = (jax.random.uniform(keys[2], (B,)) > 0.3).astype(jnp.float32)

    pred_go = jax.random.normal(keys[3], (B, 1, 3, 3), dtype=jnp.float32)   # global orient
    gt_go = jax.random.normal(keys[4], (B, 1, 3, 3), dtype=jnp.float32)
    has_go = has_bp

    pred_be = jax.random.normal(keys[5], (B, 10), dtype=jnp.float32)        # betas
    gt_be = jax.random.normal(keys[6], (B, 10), dtype=jnp.float32)
    has_be = (jax.random.uniform(keys[7], (B,)) > 0.5).astype(jnp.float32)

    # Single-group path (full-extent block, grid (1,1)).
    loss_bp = jax.block_until_ready(parameter_loss(pred_bp, gt_bp, has_bp))
    ref_bp = _reference(pred_bp, gt_bp, has_bp)
    assert jnp.allclose(loss_bp, ref_bp, rtol=1e-4, atol=1e-4), (loss_bp, ref_bp)

    # Fused path: one pallas_call for all three groups.
    fused = parameter_loss_grouped([(pred_bp, gt_bp, has_bp),
                                    (pred_go, gt_go, has_go),
                                    (pred_be, gt_be, has_be)])
    fused = [jax.block_until_ready(x) for x in fused]
    refs = [_reference(pred_bp, gt_bp, has_bp),
            _reference(pred_go, gt_go, has_go),
            _reference(pred_be, gt_be, has_be)]
    for got, want in zip(fused, refs):
        assert jnp.allclose(got, want, rtol=1e-4, atol=1e-4), (got, want)

    # Ragged feature axis (D > _MAX_TD, not tile-aligned) -> in-kernel column mask.
    pred_w = jax.random.normal(keys[8], (4, 5000), dtype=jnp.float32)
    gt_w = jax.random.normal(keys[9], (4, 5000), dtype=jnp.float32)
    has_w = jnp.array([1.0, 0.0, 1.0, 1.0], dtype=jnp.float32)
    loss_w = jax.block_until_ready(parameter_loss(pred_w, gt_w, has_w))
    ref_w = _reference(pred_w, gt_w, has_w)
    assert jnp.allclose(loss_w, ref_w, rtol=1e-4, atol=1e-4), (loss_w, ref_w)

    # Ragged batch axis (B > _MAX_TB, not tile-aligned) -> in-kernel row mask
    # plus per-i partial sums across two batch blocks.
    pred_t = jax.random.normal(keys[10], (300, 64), dtype=jnp.float32)
    gt_t = jax.random.normal(keys[11], (300, 64), dtype=jnp.float32)
    has_t = (jax.random.uniform(keys[2], (300,)) > 0.5).astype(jnp.float32)
    loss_t = jax.block_until_ready(parameter_loss(pred_t, gt_t, has_t))
    ref_t = _reference(pred_t, gt_t, has_t)
    assert jnp.allclose(loss_t, ref_t, rtol=1e-4, atol=1e-4), (loss_t, ref_t)

    print("KERNEL_OK")
</pallas_src>

<mosaic_0001>
module attributes {stable_mosaic.version = 11 : i64} {
  func.func @_tiled_kernel(%arg0: i32, %arg1: i32, %arg2: memref<2x216xf32, #tpu.memory_space<vmem>>, %arg3: memref<2x216xf32, #tpu.memory_space<vmem>>, %arg4: memref<2x1xf32, #tpu.memory_space<vmem>>, %arg5: memref<1x1xf32, #tpu.memory_space<smem>>) attributes {dimension_semantics = [#tpu.dimension_semantics<parallel>, #tpu.dimension_semantics<arbitrary>], iteration_bounds = array<i64: 1, 1>, scalar_prefetch = 0 : i64, scratch_operands = 0 : i64, tpu.core_type = #tpu.core_type<tc>, window_params = [{transform_indices = @transform_0, window_bounds = array<i64: 2, 216>}, {transform_indices = @transform_1, window_bounds = array<i64: 2, 216>}, {transform_indices = @transform_2, window_bounds = array<i64: 2, 1>}, {transform_indices = @transform_3, window_bounds = array<i64: 1, 1>}]} {
    %c0_i32 = arith.constant 0 : i32
    %0 = arith.cmpi eq, %arg1, %c0_i32 : i32
    %1 = arith.extui %0 : i1 to i32
    %c0_i32_0 = arith.constant 0 : i32
    %2 = arith.cmpi ne, %1, %c0_i32_0 : i32
    scf.if %2 {
      %cst_10 = arith.constant 0.000000e+00 : f32
      %c0_11 = arith.constant 0 : index
      %c0_12 = arith.constant 0 : index
      %17 = memref.load %arg5[%c0_11, %c0_12] : memref<1x1xf32, #tpu.memory_space<smem>>
      memref.store %cst_10, %arg5[%c0_11, %c0_12] : memref<1x1xf32, #tpu.memory_space<smem>>
    } else {
    }
    %c0 = arith.constant 0 : index
    %c0_1 = arith.constant 0 : index
    %3 = vector.load %arg2[%c0, %c0_1] : memref<2x216xf32, #tpu.memory_space<vmem>>, vector<2x216xf32>
    %c0_2 = arith.constant 0 : index
    %c0_3 = arith.constant 0 : index
    %4 = vector.load %arg3[%c0_2, %c0_3] : memref<2x216xf32, #tpu.memory_space<vmem>>, vector<2x216xf32>
    %5 = arith.subf %3, %4 : vector<2x216xf32>
    %c0_4 = arith.constant 0 : index
    %c0_5 = arith.constant 0 : index
    %6 = vector.load %arg4[%c0_4, %c0_5] : memref<2x1xf32, #tpu.memory_space<vmem>>, vector<2x1xf32>
    %7 = arith.mulf %5, %5 : vector<2x216xf32>
    %8 = vector.broadcast %6 : vector<2x1xf32> to vector<2x216xf32>
    %9 = arith.mulf %8, %7 : vector<2x216xf32>
    %c0_6 = arith.constant 0 : index
    %c0_7 = arith.constant 0 : index
    %10 = memref.load %arg5[%c0_6, %c0_7] : memref<1x1xf32, #tpu.memory_space<smem>>
    %11 = vector.shape_cast %9 : vector<2x216xf32> to vector<1x2x216xf32>
    %cst = arith.constant dense<0.000000e+00> : vector<1xf32>
    %12 = vector.multi_reduction <add>, %11, %cst [1, 2] : vector<1x2x216xf32> to vector<1xf32>
    %13 = vector.shape_cast %12 : vector<1xf32> to vector<1x1x1xf32>
    %14 = vector.extract %13[0, 0, 0] : f32 from vector<1x1x1xf32>
    %15 = arith.addf %10, %14 : f32
    %c0_8 = arith.constant 0 : index
    %c0_9 = arith.constant 0 : index
    %16 = memref.load %arg5[%c0_8, %c0_9] : memref<1x1xf32, #tpu.memory_space<smem>>
    memref.store %15, %arg5[%c0_8, %c0_9] : memref<1x1xf32, #tpu.memory_space<smem>>
    return
  }
  func.func @transform_0(%arg0: i32, %arg1: i32) -> (i32, i32) {
    %c0_i32 = arith.constant 0 : i32
    return %arg0, %arg1 : i32, i32
  }
  func.func @transform_1(%arg0: i32, %arg1: i32) -> (i32, i32) {
    %c0_i32 = arith.constant 0 : i32
    return %arg0, %arg1 : i32, i32
  }
  func.func @transform_2(%arg0: i32, %arg1: i32) -> (i32, i32) {
    %c0_i32 = arith.constant 0 : i32
    %c0_i32_0 = arith.constant 0 : i32
    return %arg0, %c0_i32 : i32, i32
  }
  func.func @transform_3(%arg0: i32, %arg1: i32) -> (i32, i32) {
    %c0_i32 = arith.constant 0 : i32
    %c0_i32_0 = arith.constant 0 : i32
    return %arg0, %c0_i32 : i32, i32
  }
}

</mosaic_0001>

<bundles_post_ra>
// kernel: tpu_custom_call.1
= control target key start
LH: loop header
LB: loop body
LE: loop exit
PB: predicated region body
PF: predicated region fallthrough
CT: control target
= control target key end

     0   :  { %8 = vsyncpa [#allocation3], 0  ;;  %s186_s0 = inlined_call_operand.hbm [shape: f32[2,216], index: 0, kind: input, shape index: {}]   ;;  %s187_s1 = inlined_call_operand.vmem [shape: f32[2,216], index: 1, kind: input, shape index: {}]   ;;  %s188_s2 = inlined_call_operand.vmem [shape: f32[2,1], index: 2, kind: input, shape index: {}]   ;;  %s189_s3 = inlined_call_operand.hbm [shape: f32[1,1], index: 3, kind: output, shape index: {}]  }
   0x1   :  { %9 = vsyncpa [#allocation4], 0  ;;  %s132_s12 = smov [#allocation2]   ;;  %s96_s16 = scalar_lea.hbm %s186_s0, 64 }
   0x2   :  { %s16_s13 = sshll.u32 %s132_s12, 4  ;;  %p97_p0 = scmp.ne.s32.totalorder %s186_s0, %s96_s16  ;;  %s17_s13 = int_to_ptr.vmem [resolvable:$true] %s16_s13 }
   0x3   :  { %p100_p1 = scmp.lt.u32.totalorder %s96_s16, %s186_s0 }
   0x5   :  { %p102_p2 = pnand %p100_p1, %p97_p0 }
   0x7   :  { %105 = shalt.err (!%p102_p2)
}
   0x8   :  { %s106_s21 = scalar_lea.vmem %s17_s13, 64  ;;  %p111_p4 = scmp.lt.s32.totalorder %s17_s13, %s17_s13 }
   0x9   :  { %p107_p3 = scmp.ne.s32.totalorder %s17_s13, %s106_s21  ;;  %p112_p5 = scmp.lt.s32.totalorder %s106_s21, %s106_s21 }
   0xb   :  { %p113_p6 = por %p112_p5, %p111_p4 }
   0xd   :  { %p114_p7 = pnand %p113_p6, %p107_p3 }
   0xf   :  { %117 = shalt.err (!%p114_p7)
}
  0x10   :  { %19 = dma.hbm_to_vmem [thread:$0]  %s186_s0, 64, %s17_s13, [#allocation3]  }
  0x11   :  { %128 = dma.done.wait [#allocation3], 64  }
  0x12   :  { %129 = vsyncadd [#allocation3], 4294967232  ;;  %v133_v0 = vmov 0   ;;  %v36_v1 = vld [vmem:[%s188_s2] sm:$0x3]  ;;  %v47_v4 = vlaneseq  ;;  %vm57_vm0 = vcmask 1041408  }
  0x13   :  { %95 = vset.pattern.permute.xlu0 %v133_v0  ;;  %v134_v2 = vmov 1983009808   ;;  %v33_v5 = vld [vmem:[#allocation2] sm:$0xf]  ;;  %vm59_vm1 = vcmask 713728   ;;  %s118_s28 = scalar_lea.hbm %s189_s3, 16 }
  0x14   :  { %40 = vperm.xlu0 %95, %v36_v1   ;;  %v45_v3 = vunpack.c.l.s4 %v134_v2  ;;  %v34_v6 = vld [vmem:[%s187_s1] sm:$0xf]  ;;  %v48_v8 = vshrl.u32 %v47_v4, 7  ;;  %p119_p8 = scmp.ne.s32.totalorder %s189_s3, %s118_s28  ;;  %p122_p9 = scmp.lt.u32.totalorder %s118_s28, %s189_s3 }
  0x15   :  { %v35_v9 = vsub.f32 %v33_v5, %v34_v6 }
  0x16   :  { %v46_v7 = vunpack.c.0.s8 %v45_v3  ;;  %p124_p10 = pnand %p122_p9, %p119_p8 }
  0x17   :  { %v37_v11 = vmul.f32 %v35_v9, %v35_v9 }
  0x18   :  { %v49_v10 = vsub.s32 %v46_v7, %v48_v8 }
  0x1a   :  { %v50_v12 = vrot.slane %v37_v11, %v49_v10 }
  0x1c   :  { %v51_v13 = vcombine.high %v50_v12, %v50_v12 }
  0x93   :  { %v41_v14 = vpop.permute.xlu0 %40 }
  0x94   :  { %v54_v15 = vmul.f32 %v50_v12, %v41_v14  ;;  %v55_v16 = vmul.f32 %v51_v13, %v41_v14 }
  0x96   :  { %v58_v17 = vsel %vm57_vm0, %v54_v15, 0.0  ;;  %v60_v18 = vsel %vm59_vm1, %v55_v16, 0.0 }
  0x97   :  { %v61_v19 = vadd.f32 %v60_v18, %v58_v17 }
  0x99   :  { %62 = vadd.xlane.f32.xlu0 %v61_v19 }
 0x126   :  { %v63_v20 = vpop.xlane.xlu0 %62 }
 0x127   :  { %v64_v21 = vrot.slane %v63_v20, 4 }
 0x129   :  { %v65_v22 = vadd.f32 %v64_v21, %v63_v20 }
 0x12b   :  { %v66_v23 = vrot.slane %v65_v22, 2 }
 0x12d   :  { %v67_v24 = vadd.f32 %v66_v23, %v65_v22 }
 0x12f   :  { %v68_v25 = vrot.slane %v67_v24, 1 }
 0x131   :  { %v69_v26 = vadd.f32 %v68_v25, %v67_v24 }
 0x133   :  { %88 = vpush %v69_v26 }
 0x164   :  { %s89_s0 = spop %88 }
 0x165   :  { %73 = sst [smem:[#allocation5]] %s89_s0 }
 0x166   :  { %127 = shalt.err (!%p124_p10)
}
 0x167   :  { %s135_s6 = smov [#allocation5]  }
 0x168   :  { %81 = dma.smem_to_hbm %s135_s6, 16, %s189_s3, [#allocation4]  }
 0x169   :  { %130 = dma.done.wait [#allocation4], 16  }
 0x16a   :  { %131 = vsyncadd [#allocation4], 4294967280 }
 0x16b   :  { %85 = sfence }
 0x16c   :  { %86 = vsyncpa [#allocation3], 1 }
 0x16d   :  { %87 = vsyncpa [#allocation4], 1 }

</bundles_post_ra>
